<compile_context>
chip_gen: v6e
topology: v6e:2x2x1
jax: 0.10.0
libtpu: 0.0.40
codegen_flags: <defaults>
</compile_context>

<pallas_src>
import jax
import jax.numpy as jnp
import numpy as np
from jax.experimental import pallas as pl
from jax.experimental.pallas import tpu as pltpu

_LANE = 128
_SUBLANE = 8


def _round_up(x, m):
    return ((x + m - 1) // m) * m


def actor_kernel(x_ref, w1_ref, b1_ref, w2_ref, b2_ref, w3_ref, b3_ref, o_ref):
    x = x_ref[...]                                            # (tb, state_dim)

    # layer 1: linear + relu (cast only at the dot boundary; no-op for f32)
    h = jnp.dot(x.astype(w1_ref.dtype), w1_ref[...],
                preferred_element_type=jnp.float32)
    h = jnp.maximum(h + b1_ref[...], 0.0)                     # (tb, h1p)

    # layer 2: linear + relu
    h = jnp.dot(h.astype(w2_ref.dtype), w2_ref[...],
                preferred_element_type=jnp.float32)
    h = jnp.maximum(h + b2_ref[...], 0.0)                     # (tb, h2p)

    # layer 3: linear + tanh, written straight to the narrow (tb, action_dim)
    # output block (a few masked vst.msk per tile beats 32x write inflation)
    y = jnp.dot(h.astype(w3_ref.dtype), w3_ref[...],
                preferred_element_type=jnp.float32)
    o_ref[...] = jnp.tanh(y + b3_ref[...])                    # (tb, action_dim)


def prepare_actor_params(params, matmul_dtype=jnp.float32):
    """One-time prep: lane-pad hidden dims to 128, keep the output dim narrow.

    Weights are stored (in, out) = PyTorch weight transposed, so the kernel
    computes x @ W + b directly.  Zero-padded columns keep relu over the
    padding at exactly 0, so semantics are preserved.
    """
    w1, b1, w2, b2, w3, b3 = params
    state_dim, h1 = w1.shape
    h2 = w2.shape[1]
    action_dim = w3.shape[1]

    h1p = _round_up(h1, _LANE)
    h2p = _round_up(h2, _LANE)

    wdt = matmul_dtype
    w1p = jnp.zeros((state_dim, h1p), wdt).at[:, :h1].set(w1.astype(wdt))
    w2p = jnp.zeros((h1p, h2p), wdt).at[:h1, :h2].set(w2.astype(wdt))
    w3p = jnp.zeros((h2p, action_dim), wdt).at[:h2, :].set(w3.astype(wdt))
    b1p = jnp.zeros((1, h1p), jnp.float32).at[:, :h1].set(jnp.reshape(b1, (1, h1)))
    b2p = jnp.zeros((1, h2p), jnp.float32).at[:, :h2].set(jnp.reshape(b2, (1, h2)))
    b3p = jnp.reshape(b3, (1, action_dim)).astype(jnp.float32)
    return (w1p, b1p, w2p, b2p, w3p, b3p)


def actor_forward(state, padded_params, *, block_batch=2048):
    """Fused Actor MLP forward.  `state` is (B, state_dim) float32."""
    w1p, b1p, w2p, b2p, w3p, b3p = padded_params
    B, state_dim = state.shape
    assert w1p.shape[0] == state_dim
    h1p = w1p.shape[1]
    h2p = w2p.shape[1]
    action_dim = w3p.shape[1]

    # ---- batch tiling -------------------------------------------------------
    # Large enough batch: split into >= 2 sublane-aligned tiles (v7x megacore)
    # capped at block_batch; a ragged tail tile is handled by Pallas masking
    # (no jnp.pad copy of the state).  Tiny batch: one full-array block, whose
    # dims equal the array dims so the (8,128) rule does not apply.
    if B >= 2 * _SUBLANE:
        tb = min(_round_up(block_batch, _SUBLANE),
                 _round_up(pl.cdiv(B, 2), _SUBLANE))
        num_blocks = pl.cdiv(B, tb)
    else:
        tb = B
        num_blocks = 1

    const = lambda i: (0, 0)  # weights/biases: DMA'd once, VMEM-resident

    out = pl.pallas_call(
        actor_kernel,
        out_shape=jax.ShapeDtypeStruct((B, action_dim), jnp.float32),
        grid=(num_blocks,),
        in_specs=[
            pl.BlockSpec((tb, state_dim), lambda i: (i, 0)),   # state tile
            pl.BlockSpec((state_dim, h1p), const),             # w1
            pl.BlockSpec((1, h1p), const),                     # b1
            pl.BlockSpec((h1p, h2p), const),                   # w2
            pl.BlockSpec((1, h2p), const),                     # b2
            pl.BlockSpec((h2p, action_dim), const),            # w3
            pl.BlockSpec((1, action_dim), const),              # b3
        ],
        out_specs=pl.BlockSpec((tb, action_dim), lambda i: (i, 0)),
        compiler_params=pltpu.CompilerParams(
            dimension_semantics=("parallel",)),
    )(state, w1p, b1p, w2p, b2p, w3p, b3p)
    return out


def init_actor_params(key, state_dim, action_dim, h1=64, h2=32, init_w=0.003):
    """Deterministic parameter init mirroring the PyTorch module's __init__.

    PyTorch fanin_ uses fan_in = weight.size()[0] = out_features (as written);
    biases use nn.Linear's default U(-1/sqrt(in_features), 1/sqrt(in_features)).
    Weights are stored as (in, out) = PyTorch weight transposed.
    """
    ks = jax.random.split(key, 6)

    def uni(k, shape, bound):
        return jax.random.uniform(k, shape, jnp.float32, -bound, bound)

    w1 = uni(ks[0], (state_dim, h1), 1.0 / np.sqrt(h1))
    b1 = uni(ks[1], (1, h1), 1.0 / np.sqrt(state_dim))
    w2 = uni(ks[2], (h1, h2), 1.0 / np.sqrt(h2))
    b2 = uni(ks[3], (1, h2), 1.0 / np.sqrt(h1))
    w3 = uni(ks[4], (h2, action_dim), init_w)
    b3 = uni(ks[5], (1, action_dim), 1.0 / np.sqrt(h2))
    return (w1, b1, w2, b2, w3, b3)


def actor_reference(state, params):
    """Pure-JAX reference of the PyTorch forward for verification."""
    w1, b1, w2, b2, w3, b3 = params
    x = jnp.maximum(state @ w1 + b1, 0.0)
    x = jnp.maximum(x @ w2 + b2, 0.0)
    return jnp.tanh(x @ w3 + b3)


if __name__ == "__main__":
    key = jax.random.PRNGKey(0)
    k_param, k_state, k_big, k_ragged = jax.random.split(key, 4)

    batch, state_dim, action_dim = 2, 16, 4
    params = init_actor_params(k_param, state_dim, action_dim, h1=64, h2=32)
    padded = prepare_actor_params(params)  # one-time prep (hoisted out of fwd)

    # Small-batch path (B=2 -> single full-array block, no padding anywhere).
    state = jax.random.normal(k_state, (batch, state_dim), jnp.float32)
    out = jax.block_until_ready(actor_forward(state, padded))
    ref = actor_reference(state, params)
    np.testing.assert_allclose(np.asarray(out), np.asarray(ref),
                               rtol=1e-5, atol=1e-5)
    assert out.shape == (batch, action_dim)

    # Even batch grid: 512 rows -> two 256-row tiles (>=2 blocks for v7x),
    # resident weights, narrow (B, 4) output, no post-kernel slice.
    big_state = jax.random.normal(k_big, (512, state_dim), jnp.float32)
    big_out = jax.block_until_ready(actor_forward(big_state, padded))
    np.testing.assert_allclose(np.asarray(big_out),
                               np.asarray(actor_reference(big_state, params)),
                               rtol=1e-5, atol=1e-5)
    assert big_out.shape == (512, action_dim)

    # Ragged-tail path: 300 rows -> tb=152, grid=(2,), last tile masked by
    # Pallas (no jnp.pad copy of the state).
    rag_state = jax.random.normal(k_ragged, (300, state_dim), jnp.float32)
    rag_out = jax.block_until_ready(actor_forward(rag_state, padded))
    np.testing.assert_allclose(np.asarray(rag_out),
                               np.asarray(actor_reference(rag_state, params)),
                               rtol=1e-5, atol=1e-5)
    assert rag_out.shape == (300, action_dim)

    print("KERNEL_OK")
</pallas_src>

<mosaic_0001>
module attributes {stable_mosaic.version = 11 : i64} {
  func.func @actor_kernel(%arg0: i32, %arg1: memref<2x16xf32, #tpu.memory_space<vmem>>, %arg2: memref<16x128xf32, #tpu.memory_space<vmem>>, %arg3: memref<1x128xf32, #tpu.memory_space<vmem>>, %arg4: memref<128x128xf32, #tpu.memory_space<vmem>>, %arg5: memref<1x128xf32, #tpu.memory_space<vmem>>, %arg6: memref<128x4xf32, #tpu.memory_space<vmem>>, %arg7: memref<1x4xf32, #tpu.memory_space<vmem>>, %arg8: memref<2x4xf32, #tpu.memory_space<vmem>>) attributes {dimension_semantics = [#tpu.dimension_semantics<parallel>], iteration_bounds = array<i64: 1>, scalar_prefetch = 0 : i64, scratch_operands = 0 : i64, tpu.core_type = #tpu.core_type<tc>, window_params = [{transform_indices = @transform_0, window_bounds = array<i64: 2, 16>}, {pipeline_mode = #tpu.pipeline_mode<synchronous>, transform_indices = @transform_1, window_bounds = array<i64: 16, 128>}, {pipeline_mode = #tpu.pipeline_mode<synchronous>, transform_indices = @transform_2, window_bounds = array<i64: 1, 128>}, {pipeline_mode = #tpu.pipeline_mode<synchronous>, transform_indices = @transform_3, window_bounds = array<i64: 128, 128>}, {pipeline_mode = #tpu.pipeline_mode<synchronous>, transform_indices = @transform_4, window_bounds = array<i64: 1, 128>}, {pipeline_mode = #tpu.pipeline_mode<synchronous>, transform_indices = @transform_5, window_bounds = array<i64: 128, 4>}, {pipeline_mode = #tpu.pipeline_mode<synchronous>, transform_indices = @transform_6, window_bounds = array<i64: 1, 4>}, {transform_indices = @transform_7, window_bounds = array<i64: 2, 4>}]} {
    %c0 = arith.constant 0 : index
    %c0_0 = arith.constant 0 : index
    %0 = vector.load %arg1[%c0, %c0_0] : memref<2x16xf32, #tpu.memory_space<vmem>>, vector<2x16xf32>
    %c0_1 = arith.constant 0 : index
    %c0_2 = arith.constant 0 : index
    %1 = vector.load %arg2[%c0_1, %c0_2] : memref<16x128xf32, #tpu.memory_space<vmem>>, vector<16x128xf32>
    %cst = arith.constant dense<0.000000e+00> : vector<2x128xf32>
    %2 = tpu.matmul %0, %1, %cst {dimension_numbers = #tpu.dot_dimension_numbers<[1], [0], [0], [1], [0, 0, 1, 1], [], []>} : vector<2x16xf32>, vector<16x128xf32>, vector<2x128xf32> -> vector<2x128xf32>
    %c0_3 = arith.constant 0 : index
    %c0_4 = arith.constant 0 : index
    %3 = vector.load %arg3[%c0_3, %c0_4] : memref<1x128xf32, #tpu.memory_space<vmem>>, vector<1x128xf32>
    %4 = vector.broadcast %3 : vector<1x128xf32> to vector<2x128xf32>
    %5 = arith.addf %2, %4 : vector<2x128xf32>
    %cst_5 = arith.constant 0.000000e+00 : f32
    %6 = vector.broadcast %cst_5 : f32 to vector<2x128xf32>
    %7 = arith.maximumf %5, %6 : vector<2x128xf32>
    %c0_6 = arith.constant 0 : index
    %c0_7 = arith.constant 0 : index
    %8 = vector.load %arg4[%c0_6, %c0_7] : memref<128x128xf32, #tpu.memory_space<vmem>>, vector<128x128xf32>
    %cst_8 = arith.constant dense<0.000000e+00> : vector<2x128xf32>
    %9 = tpu.matmul %7, %8, %cst_8 {dimension_numbers = #tpu.dot_dimension_numbers<[1], [0], [0], [1], [0, 0, 1, 1], [], []>} : vector<2x128xf32>, vector<128x128xf32>, vector<2x128xf32> -> vector<2x128xf32>
    %c0_9 = arith.constant 0 : index
    %c0_10 = arith.constant 0 : index
    %10 = vector.load %arg5[%c0_9, %c0_10] : memref<1x128xf32, #tpu.memory_space<vmem>>, vector<1x128xf32>
    %11 = vector.broadcast %10 : vector<1x128xf32> to vector<2x128xf32>
    %12 = arith.addf %9, %11 : vector<2x128xf32>
    %cst_11 = arith.constant 0.000000e+00 : f32
    %13 = vector.broadcast %cst_11 : f32 to vector<2x128xf32>
    %14 = arith.maximumf %12, %13 : vector<2x128xf32>
    %c0_12 = arith.constant 0 : index
    %c0_13 = arith.constant 0 : index
    %15 = vector.load %arg6[%c0_12, %c0_13] : memref<128x4xf32, #tpu.memory_space<vmem>>, vector<128x4xf32>
    %cst_14 = arith.constant dense<0.000000e+00> : vector<2x4xf32>
    %16 = tpu.matmul %14, %15, %cst_14 {dimension_numbers = #tpu.dot_dimension_numbers<[1], [0], [0], [1], [0, 0, 1, 1], [], []>} : vector<2x128xf32>, vector<128x4xf32>, vector<2x4xf32> -> vector<2x4xf32>
    %c0_15 = arith.constant 0 : index
    %c0_16 = arith.constant 0 : index
    %17 = vector.load %arg7[%c0_15, %c0_16] : memref<1x4xf32, #tpu.memory_space<vmem>>, vector<1x4xf32>
    %18 = vector.broadcast %17 : vector<1x4xf32> to vector<2x4xf32>
    %19 = arith.addf %16, %18 : vector<2x4xf32>
    %20 = math.tanh %19 : vector<2x4xf32>
    %c0_17 = arith.constant 0 : index
    %c0_18 = arith.constant 0 : index
    %21 = vector.load %arg8[%c0_17, %c0_18] : memref<2x4xf32, #tpu.memory_space<vmem>>, vector<2x4xf32>
    tpu.vector_store %arg8[%c0_17, %c0_18], %20 {strides = array<i32>} : memref<2x4xf32, #tpu.memory_space<vmem>>, vector<2x4xf32>,
    return
  }
  func.func @transform_0(%arg0: i32) -> (i32, i32) {
    %c0_i32 = arith.constant 0 : i32
    %c0_i32_0 = arith.constant 0 : i32
    return %arg0, %c0_i32 : i32, i32
  }
  func.func @transform_1(%arg0: i32) -> (i32, i32) {
    %c0_i32 = arith.constant 0 : i32
    %c0_i32_0 = arith.constant 0 : i32
    %c0_i32_1 = arith.constant 0 : i32
    return %c0_i32, %c0_i32_0 : i32, i32
  }
  func.func @transform_2(%arg0: i32) -> (i32, i32) {
    %c0_i32 = arith.constant 0 : i32
    %c0_i32_0 = arith.constant 0 : i32
    %c0_i32_1 = arith.constant 0 : i32
    return %c0_i32, %c0_i32_0 : i32, i32
  }
  func.func @transform_3(%arg0: i32) -> (i32, i32) {
    %c0_i32 = arith.constant 0 : i32
    %c0_i32_0 = arith.constant 0 : i32
    %c0_i32_1 = arith.constant 0 : i32
    return %c0_i32, %c0_i32_0 : i32, i32
  }
  func.func @transform_4(%arg0: i32) -> (i32, i32) {
    %c0_i32 = arith.constant 0 : i32
    %c0_i32_0 = arith.constant 0 : i32
    %c0_i32_1 = arith.constant 0 : i32
    return %c0_i32, %c0_i32_0 : i32, i32
  }
  func.func @transform_5(%arg0: i32) -> (i32, i32) {
    %c0_i32 = arith.constant 0 : i32
    %c0_i32_0 = arith.constant 0 : i32
    %c0_i32_1 = arith.constant 0 : i32
    return %c0_i32, %c0_i32_0 : i32, i32
  }
  func.func @transform_6(%arg0: i32) -> (i32, i32) {
    %c0_i32 = arith.constant 0 : i32
    %c0_i32_0 = arith.constant 0 : i32
    %c0_i32_1 = arith.constant 0 : i32
    return %c0_i32, %c0_i32_0 : i32, i32
  }
  func.func @transform_7(%arg0: i32) -> (i32, i32) {
    %c0_i32 = arith.constant 0 : i32
    %c0_i32_0 = arith.constant 0 : i32
    return %arg0, %c0_i32 : i32, i32
  }
}

</mosaic_0001>

<bundles_post_ra>
// kernel: tpu_custom_call.1
= control target key start
LH: loop header
LB: loop body
LE: loop exit
PB: predicated region body
PF: predicated region fallthrough
CT: control target
= control target key end

     0   :  { %12 = vsyncpa [#allocation3], 0  ;;  %s701_s0 = inlined_call_operand.vmem [shape: f32[2,16], index: 0, kind: input, shape index: {}]   ;;  %s702_s1 = inlined_call_operand.hbm [shape: f32[16,128], index: 1, kind: input, shape index: {}]   ;;  %s703_s2 = inlined_call_operand.vmem [shape: f32[1,128], index: 2, kind: input, shape index: {}]   ;;  %s704_s3 = inlined_call_operand.vmem [shape: f32[128,128], index: 3, kind: input, shape index: {}]   ;;  %s705_s4 = inlined_call_operand.vmem [shape: f32[1,128], index: 4, kind: input, shape index: {}]   ;;  %s706_s5 = inlined_call_operand.vmem [shape: f32[128,4], index: 5, kind: input, shape index: {}]   ;;  %s707_s6 = inlined_call_operand.vmem [shape: f32[1,4], index: 6, kind: input, shape index: {}]   ;;  %s708_s7 = inlined_call_operand.hbm [shape: f32[2,4], index: 7, kind: output, shape index: {}]  }
   0x1   :  { %13 = vsyncpa [#allocation4], 0  ;;  %s501_s24 = smov [#allocation2]  }
   0x2   :  { %s21_s25 = sshll.u32 %s501_s24, 4  ;;  %s22_s25 = int_to_ptr.vmem [resolvable:$true] %s21_s25 }
   0x3   :  { %s465_s26 = scalar_lea.vmem %s22_s25, 256  ;;  %p470_p1 = scmp.lt.s32.totalorder %s22_s25, %s22_s25 }
   0x4   :  { %p466_p0 = scmp.ne.s32.totalorder %s22_s25, %s465_s26  ;;  %p471_p2 = scmp.lt.s32.totalorder %s465_s26, %s465_s26 }
   0x6   :  { %p472_p3 = por %p471_p2, %p470_p1 }
   0x8   :  { %p473_p4 = pnand %p472_p3, %p466_p0 }
   0xa   :  { %476 = shalt.err (!%p473_p4)
}
   0xb   :  { %s502_s27 = smov 128   ;;  %s503_s28 = smov 8  }
   0xc   :  { %27 = dma.hbm_to_vmem [thread:$0]  %s702_s1, 256, %s22_s25, [#allocation3], %s502_s27, %s502_s27, %s503_s28  }
   0xd   :  { %497 = dma.done.wait [#allocation3], 256  }
   0xe   :  { %498 = vsyncadd [#allocation3], 4294967040  ;;  %v504_v0 = vmov 0.0   ;;  %vm505_vm0 = vmmov 0   ;;  %v43_v1 = vld [vmem:[#allocation2 + $0x8] sm:$0xff]  ;;  %v42_v2 = vld [vmem:[#allocation2] sm:$0xff] }
   0xf   :  { %372 = vmatprep.subr.mxu0 %v504_v0  ;;  %376 = vmatprep.mubr.msk.f32.mxu0 %vm505_vm0, %v504_v0  ;;  %v41_v3 = vld [vmem:[%s701_s0] sm:$0x3]  ;;  %vm51_vm1 = vcmask 130048   ;;  %v141_v4 = vld [vmem:[%s704_s3 + $0x78] sm:$0xff]  ;;  %v140_v5 = vld [vmem:[%s704_s3 + $0x70] sm:$0xff]  ;;  %s506_s25 = smov [#allocation5]  }
  0x10   :  { %379 = vmatprep.subr.mxu1 %v504_v0  ;;  %411 = vmatprep.mubr.msk.f32.mxu1 %vm505_vm0, %v504_v0  ;;  %v139_v6 = vld [vmem:[%s704_s3 + $0x68] sm:$0xff]  ;;  %v138_v7 = vld [vmem:[%s704_s3 + $0x60] sm:$0xff]  ;;  %v137_v8 = vld [vmem:[%s704_s3 + $0x58] sm:$0xff]  ;;  %vm314_vm2 = vcmask 25600  }
  0x11   :  { %373 = vmatpush3.msra.mxu0 %v43_v1  ;;  %380 = vmatpush3.msra.mxu1 %v141_v4  ;;  %v136_v9 = vld [vmem:[%s704_s3 + $0x50] sm:$0xff]  ;;  %v135_v10 = vld [vmem:[%s704_s3 + $0x48] sm:$0xff]  ;;  %v134_v11 = vld [vmem:[%s704_s3 + $0x40] sm:$0xff] }
  0x12   :  { %374 = vmatprep.subr.mxu0 %v504_v0  ;;  %381 = vmatprep.subr.mxu1 %v504_v0  ;;  %v133_v12 = vld [vmem:[%s704_s3 + $0x38] sm:$0xff]  ;;  %v132_v13 = vld [vmem:[%s704_s3 + $0x30] sm:$0xff]  ;;  %v131_v14 = vld [vmem:[%s704_s3 + $0x28] sm:$0xff] }
  0x13   :  { %375 = vmatpush3.msra.mxu0 %v42_v2  ;;  %382 = vmatpush3.msra.mxu1 %v140_v5  ;;  %v130_v15 = vld [vmem:[%s704_s3 + $0x20] sm:$0xff]  ;;  %v129_v16 = vld [vmem:[%s704_s3 + $0x18] sm:$0xff]  ;;  %v128_v17 = vld [vmem:[%s704_s3 + $0x10] sm:$0xff] }
  0x14   :  { %377 = vmatmul.mubr.msk.f32.vlgmr.msra.gmra.mxu0 %vm51_vm1, %v41_v3  ;;  %383 = vmatprep.subr.mxu1 %v504_v0  ;;  %v127_v18 = vld [vmem:[%s704_s3 + $0x8] sm:$0xff]  ;;  %v126_v19 = vld [vmem:[%s704_s3] sm:$0xff]  ;;  %v235_v20 = vld [vmem:[%s706_s5 + $0x78] sm:$0xff] }
  0x15   :  { %414 = vmatprep.subr.mxu0 %v504_v0  ;;  %384 = vmatpush3.msra.mxu1 %v139_v6  ;;  %v234_v21 = vld [vmem:[%s706_s5 + $0x70] sm:$0xff]  ;;  %v233_v22 = vld [vmem:[%s706_s5 + $0x68] sm:$0xff]  ;;  %v232_v23 = vld [vmem:[%s706_s5 + $0x60] sm:$0xff] }
  0x16   :  { %446 = vmatprep.mubr.msk.f32.mxu0 %vm505_vm0, %v504_v0  ;;  %385 = vmatprep.subr.mxu1 %v504_v0  ;;  %v231_v24 = vld [vmem:[%s706_s5 + $0x58] sm:$0xff]  ;;  %v230_v25 = vld [vmem:[%s706_s5 + $0x50] sm:$0xff]  ;;  %v229_v26 = vld [vmem:[%s706_s5 + $0x48] sm:$0xff] }
  0x17   :  { %386 = vmatpush3.msra.mxu1 %v138_v7  ;;  %415 = vmatpush3.msra.mxu0 %v235_v20  ;;  %v228_v27 = vld [vmem:[%s706_s5 + $0x40] sm:$0xff]  ;;  %v227_v28 = vld [vmem:[%s706_s5 + $0x38] sm:$0xff]  ;;  %v226_v29 = vld [vmem:[%s706_s5 + $0x30] sm:$0xff] }
  0x18   :  { %387 = vmatprep.subr.mxu1 %v504_v0  ;;  %416 = vmatprep.subr.mxu0 %v504_v0  ;;  %v225_v30 = vld [vmem:[%s706_s5 + $0x28] sm:$0xff]  ;;  %v224_v31 = vld [vmem:[%s706_s5 + $0x20] sm:$0xff]  ;;  %v223_v32 = vld [vmem:[%s706_s5 + $0x18] sm:$0xff] }
  0x19   :  { %388 = vmatpush3.msra.mxu1 %v137_v8  ;;  %417 = vmatpush3.msra.mxu0 %v234_v21  ;;  %v331_v33 = vld [vmem:[%s703_s2] ss:$0 sm:$0xff]  ;;  %v222_v38 = vld [vmem:[%s706_s5 + $0x10] sm:$0xff]  ;;  %v221_v39 = vld [vmem:[%s706_s5 + $0x8] sm:$0xff] }
  0x1a   :  { %389 = vmatprep.subr.mxu1 %v504_v0  ;;  %418 = vmatprep.subr.mxu0 %v504_v0  ;;  %v220_v40 = vld [vmem:[%s706_s5] sm:$0xff]  ;;  %s322_s5 = sshll.u32 %s506_s25, 4  ;;  %s323_s5 = int_to_ptr.vmem [resolvable:$true] %s322_s5 }
  0x1b   :  { %390 = vmatpush3.msra.mxu1 %v136_v9  ;;  %419 = vmatpush3.msra.mxu0 %v233_v22  ;;  %v333_v41 = vld [vmem:[%s705_s4] ss:$0 sm:$0xff]  ;;  %s477_s4 = scalar_lea.vmem %s323_s5, 32  ;;  %p482_p6 = scmp.lt.s32.totalorder %s323_s5, %s323_s5 }
  0x1c   :  { %391 = vmatprep.subr.mxu1 %v504_v0  ;;  %420 = vmatprep.subr.mxu0 %v504_v0  ;;  %v334_v46 = vld [vmem:[%s707_s6] ss:$0 sm:$0xff]  ;;  %p478_p5 = scmp.ne.s32.totalorder %s323_s5, %s477_s4  ;;  %p483_p7 = scmp.lt.s32.totalorder %s477_s4, %s477_s4 }
  0x1d   :  { %392 = vmatpush3.msra.mxu1 %v135_v10  ;;  %421 = vmatpush3.msra.mxu0 %v232_v23 }
  0x1e   :  { %393 = vmatprep.subr.mxu1 %v504_v0  ;;  %422 = vmatprep.subr.mxu0 %v504_v0  ;;  %p484_p8 = por %p483_p7, %p482_p6 }
  0x1f   :  { %394 = vmatpush3.msra.mxu1 %v134_v11  ;;  %423 = vmatpush3.msra.mxu0 %v231_v24 }
  0x20   :  { %395 = vmatprep.subr.mxu1 %v504_v0  ;;  %424 = vmatprep.subr.mxu0 %v504_v0  ;;  %p485_p9 = pnand %p484_p8, %p478_p5 }
  0x21   :  { %396 = vmatpush3.msra.mxu1 %v133_v12  ;;  %425 = vmatpush3.msra.mxu0 %v230_v25 }
  0x22   :  { %397 = vmatprep.subr.mxu1 %v504_v0  ;;  %426 = vmatprep.subr.mxu0 %v504_v0 }
  0x23   :  { %398 = vmatpush3.msra.mxu1 %v132_v13  ;;  %427 = vmatpush3.msra.mxu0 %v229_v26 }
  0x24   :  { %399 = vmatprep.subr.mxu1 %v504_v0  ;;  %428 = vmatprep.subr.mxu0 %v504_v0 }
  0x25   :  { %400 = vmatpush3.msra.mxu1 %v131_v14  ;;  %429 = vmatpush3.msra.mxu0 %v228_v27 }
  0x26   :  { %401 = vmatprep.subr.mxu1 %v504_v0  ;;  %430 = vmatprep.subr.mxu0 %v504_v0 }
  0x27   :  { %402 = vmatpush3.msra.mxu1 %v130_v15  ;;  %431 = vmatpush3.msra.mxu0 %v227_v28 }
  0x28   :  { %403 = vmatprep.subr.mxu1 %v504_v0  ;;  %432 = vmatprep.subr.mxu0 %v504_v0 }
  0x29   :  { %404 = vmatpush3.msra.mxu1 %v129_v16  ;;  %433 = vmatpush3.msra.mxu0 %v226_v29 }
  0x2a   :  { %405 = vmatprep.subr.mxu1 %v504_v0  ;;  %434 = vmatprep.subr.mxu0 %v504_v0 }
  0x2b   :  { %406 = vmatpush3.msra.mxu1 %v128_v17  ;;  %435 = vmatpush3.msra.mxu0 %v225_v30 }
  0x2c   :  { %407 = vmatprep.subr.mxu1 %v504_v0  ;;  %436 = vmatprep.subr.mxu0 %v504_v0 }
  0x2d   :  { %408 = vmatpush3.msra.mxu1 %v127_v18  ;;  %437 = vmatpush3.msra.mxu0 %v224_v31 }
  0x2e   :  { %409 = vmatprep.subr.mxu1 %v504_v0  ;;  %438 = vmatprep.subr.mxu0 %v504_v0 }
  0x2f   :  { %410 = vmatpush3.msra.mxu1 %v126_v19  ;;  %439 = vmatpush3.msra.mxu0 %v223_v32 }
  0x30   :  { %440 = vmatprep.subr.mxu0 %v504_v0 }
  0x31   :  { %441 = vmatpush3.msra.mxu0 %v222_v38 }
  0x32   :  { %442 = vmatprep.subr.mxu0 %v504_v0 }
  0x33   :  { %443 = vmatpush3.msra.mxu0 %v221_v39 }
  0x34   :  { %444 = vmatprep.subr.mxu0 %v504_v0 }
  0x35   :  { %445 = vmatpush3.msra.mxu0 %v220_v40 }
  0xd4   :  { %v121_v34 = vpop.f32.mrf.mxu0 }
  0xd5   :  { %v122_v35 = vadd.f32 %v331_v33, %v121_v34 }
  0xd6   :  { %v378_v36 = vpop.f32.mrf.mxu0 }
  0xd7   :  { %v125_v37 = vmax.f32 %v122_v35, 0.0 }
  0xd9   :  { %412 = vmatmul.mubr.f32.vlgmr.msra.gmra.mxu1 %v125_v37 }
 0x199   :  { %v215_v42 = vpop.f32.mrf.mxu1 }
 0x19a   :  { %v216_v43 = vadd.f32 %v333_v41, %v215_v42 }
 0x19b   :  { %v413_v44 = vpop.f32.mrf.mxu1 }
 0x19c   :  { %v219_v45 = vmax.f32 %v216_v43, 0.0 }
 0x19e   :  { %447 = vmatmul.mubr.f32.vlgmr.msra.gmra.mxu0 %v219_v45 }
 0x25e   :  { %v309_v47 = vpop.f32.mrf.mxu0 }
 0x25f   :  { %v310_v48 = vadd.f32 %v334_v46, %v309_v47 }
 0x260   :  { %v448_v49 = vpop.f32.mrf.mxu0 }
 0x261   :  { %455 = vtanh.f32 %v310_v48 }
 0x26e   :  { %v456_v50 = vpop.eup %455 }
 0x26f   :  { %315 = vst.msk [vmem:[#allocation5] sm:$0x3] %vm314_vm2, %v456_v50 }
 0x270   :  { %488 = shalt.err (!%p485_p9)
}
 0x271   :  { %325 = dma.vmem_to_hbm [thread:$0]  %s323_s5, 32, %s708_s7, [#allocation4]  }
 0x272   :  { %499 = dma.done.wait [#allocation4], 32  }
 0x273   :  { %500 = vsyncadd [#allocation4], 4294967264 }
 0x274   :  { %329 = vsyncpa [#allocation3], 1 }
 0x275   :  { %330 = vsyncpa [#allocation4], 1 }

</bundles_post_ra>
